<compile_context>
chip_gen: v5e
topology: v5e:2x2
jax: 0.10.0
libtpu: 0.0.40
codegen_flags: <defaults>
</compile_context>

<pallas_src>
import jax
import jax.numpy as jnp
import numpy as np
from jax.experimental import pallas as pl
from jax.experimental.pallas import tpu as pltpu


def _fused_kernel(x_ref, pw_ref, wcexp_ref, b_ref, o_ref):
    # x_ref:     [1, C, HW]  one image, lane-dense (HW on lanes)
    # pw_ref:    [HW, G]     fused view-regroup + Linear(C,1) matrix (resident)
    # wcexp_ref: [C, HW]     WcExp[j, p] = Wc[p // G, j]              (resident)
    # b_ref:     [1]         linear bias (SMEM scalar)
    # o_ref:     [1, C, HW]  output tile
    C = x_ref.shape[1]

    x_b = x_ref[0]                                                       # [C, HW]

    # A[j, g] = sum_k x[j, g*C + k] * w_lin[k]  -- the single MXU matmul of the kernel.
    a = jnp.dot(x_b, pw_ref[...], preferred_element_type=jnp.float32)    # [C, G]

    # s_row[0, r*G + g] = sum_j Wc[r, j] * A[j, g] + b  == s[r*G + g] of the spec.
    # Tile A along lanes (G -> HW) and contract j on the VPU/XLU (one sublane reduce).
    a_tiled = jnp.concatenate([a] * C, axis=-1)                          # [C, HW]
    s_row = (jnp.sum(wcexp_ref[...] * a_tiled, axis=0, keepdims=True)
             + b_ref[0])                                                 # [1, HW]

    # ctx[c] = sum_p x[c, p] * s[p]  -- one VPU multiply + one lane reduction.
    ctx = jnp.sum(x_b * s_row, axis=-1, keepdims=True)                   # [C, 1]

    o_ref[...] = (x_b + ctx).astype(o_ref.dtype)[None]


def _looped_kernel(x_ref, pw_ref, wconv_ref, b_ref, o_ref):
    # Fallback variant built only from ops proven in the previous revision
    # (two MXU dots + short per-row chunk loop).  Used only if the fused kernel
    # fails to lower on the current toolchain.
    C = x_ref.shape[1]
    G = pw_ref.shape[1]
    x_b = x_ref[0]                                                        # [C, HW]
    a = jnp.dot(x_b, pw_ref[...], preferred_element_type=jnp.float32)     # [C, G]
    s2 = jnp.dot(wconv_ref[...], a, preferred_element_type=jnp.float32) + b_ref[0]
    ctx = jnp.zeros((C, 1), jnp.float32)
    for r in range(C):  # TODO(synk): for large C collapse into a single lane-dense op.
        ctx = ctx + jnp.sum(x_ref[0, :, pl.ds(r * G, G)] * s2[r:r + 1, :],
                            axis=-1, keepdims=True)
    o_ref[...] = (x_b + ctx).astype(o_ref.dtype)[None]


def global_module_forward(x, w_conv, w_lin, b_lin):
    """x: [B, C, H, W]; w_conv: [C, C] (1x1 conv, no bias); w_lin: [1, C]; b_lin: [1]."""
    B, C, H, W = x.shape
    HW = H * W

    if HW % C != 0:
        # TODO(synk): when HW % C != 0 the flat groups of C straddle rows of the conv
        # output, so the single-matmul regroup does not apply; fall back to plain XLA.
        return _reference(x, w_conv, w_lin, b_lin)

    G = HW // C
    xf = x.reshape(B, C, HW)
    w_vec = w_lin.reshape(C).astype(jnp.float32)
    bias = b_lin.reshape(1).astype(jnp.float32)
    wc = w_conv.astype(jnp.float32)

    # P_w[p, g] = w_lin[p % C] * (p // C == g): one MXU matmul performs both the
    # `.view(B, HW, C)` reinterpretation and the Linear(C, 1) projection.
    # TODO(synk): for very large HW with small C replace this [HW, G] matrix by an
    # in-kernel grouped lane reduction (or store it in bf16) to avoid HW^2 MACs.
    p_idx = jnp.arange(HW, dtype=jnp.int32)
    g_idx = jnp.arange(G, dtype=jnp.int32)
    pw = jnp.where((p_idx[:, None] // C) == g_idx[None, :],
                   w_vec[p_idx % C][:, None], 0.0).astype(jnp.float32)        # [HW, G]

    # WcExp[j, p] = Wc[p // G, j]: lets the kernel form s_row ([1, HW], lane-dense)
    # without any relayout of the [C, G] intermediate and without a per-row loop.
    wc_exp = jnp.repeat(wc.T, G, axis=1)                                       # [C, HW]

    # ---- VMEM budget / compiler params ------------------------------------------
    blk = C * HW * 4
    est = (2 * 2 * blk                           # x + out tiles, double-buffered
           + 2 * (HW * G * 4 + C * HW * 4)       # weights (x2 headroom if not Buffered(1))
           + 6 * blk)                            # in-kernel temporaries headroom
    try:
        phys_vmem = int(pltpu.get_tpu_info().vmem_capacity_bytes)
    except Exception:
        phys_vmem = 64 * 1024 * 1024             # conservative: v7x per-core VMEM
    cap = min((phys_vmem * 7) // 8, 110 * 1024 * 1024)
    cp_kwargs = {"dimension_semantics": ("parallel",)}
    if est > 16 * 1024 * 1024:                   # v5e default scoped-VMEM limit
        cp_kwargs["vmem_limit_bytes"] = int(min(est * 5 // 4, cap))
    # TODO(synk): if est exceeds `cap`, split HW over an extra "arbitrary" grid axis
    # (accumulating partial ctx in scratch) instead of growing the tile further.
    compiler_params = pltpu.CompilerParams(**cp_kwargs)

    out_shape = jax.ShapeDtypeStruct((B, C, HW), x.dtype)
    # NOTE: HW is the lane dim of the output tile; multiples of 128 give unmasked
    # stores (true for the test shape HW=256).
    x_spec = pl.BlockSpec((1, C, HW), lambda b: (b, 0, 0))
    o_spec = pl.BlockSpec((1, C, HW), lambda b: (b, 0, 0))
    smem_spec = pl.BlockSpec(memory_space=pltpu.MemorySpace.SMEM)

    def resident(shape, single_buffer):
        zero_map = lambda b: (0,) * len(shape)
        if single_buffer:
            # Constant index_map -> double-buffering buys nothing; halve VMEM.
            return pl.BlockSpec(shape, zero_map, pipeline_mode=pl.Buffered(1))
        return pl.BlockSpec(shape, zero_map)

    def run_fused(single_buffer):
        call = pl.pallas_call(
            _fused_kernel,
            out_shape=out_shape,
            grid=(B,),
            in_specs=[x_spec,
                      resident((HW, G), single_buffer),
                      resident((C, HW), single_buffer),
                      smem_spec],
            out_specs=o_spec,
            compiler_params=compiler_params,
        )
        return jax.block_until_ready(call(xf, pw, wc_exp, bias))

    def run_looped():
        call = pl.pallas_call(
            _looped_kernel,
            out_shape=out_shape,
            grid=(B,),
            in_specs=[x_spec,
                      resident((HW, G), False),
                      resident((C, C), False),
                      smem_spec],
            out_specs=o_spec,
            compiler_params=compiler_params,
        )
        return jax.block_until_ready(call(xf, pw, wc, bias))

    # Prefer the fully-fused, single-buffered variant; fall back only on compile errors.
    attempts = (lambda: run_fused(True), lambda: run_fused(False), run_looped)
    out = None
    last_err = None
    for attempt in attempts:
        try:
            out = attempt()
            break
        except Exception as e:        # config fallback only; last error re-raised below
            last_err = e
    if out is None:
        raise last_err
    return out.reshape(B, C, H, W)


def _reference(x, w_conv, w_lin, b_lin):
    """Pure-JAX reference mirroring the PyTorch forward exactly."""
    B, C, H, W = x.shape
    HW = H * W
    xf = x.reshape(B, C, HW)
    y = jnp.einsum("oc,bcp->bop", w_conv, xf)               # conv1x1, [B, C, HW]
    m = y.reshape(B, HW, C)                                 # .view(B, -1, C)
    s = m @ w_lin.T + b_lin                                 # [B, HW, 1]
    ctx = jnp.einsum("bcp,bpo->bco", xf, s)                 # [B, C, 1]
    return x + ctx.reshape(B, C, 1, 1)


if __name__ == "__main__":
    B, C, H, W = 2, 4, 16, 16
    key = jax.random.PRNGKey(0)
    kx, kw, kl, kb = jax.random.split(key, 4)

    x = jax.random.normal(kx, (B, C, H, W), dtype=jnp.float32)
    # conv_mask: Conv2d(C, C, 1, bias=False) -> weight [C, C, 1, 1] squeezed to [C, C]
    w_conv = jax.random.normal(kw, (C, C), dtype=jnp.float32) * (1.0 / np.sqrt(C))
    # linear: Linear(C, 1) -> weight [1, C], bias [1]
    w_lin = jax.random.normal(kl, (1, C), dtype=jnp.float32) * (1.0 / np.sqrt(C))
    b_lin = jax.random.normal(kb, (1,), dtype=jnp.float32) * 0.1

    out = global_module_forward(x, w_conv, w_lin, b_lin)
    out = jax.block_until_ready(out)

    ref = _reference(x, w_conv, w_lin, b_lin)
    np.testing.assert_allclose(np.asarray(out), np.asarray(ref),
                               rtol=1e-5, atol=1e-5)
    print("KERNEL_OK")
</pallas_src>

<mosaic_0001>
module attributes {stable_mosaic.version = 11 : i64} {
  func.func @_fused_kernel(%arg0: i32, %arg1: memref<1x4x256xf32, #tpu.memory_space<vmem>>, %arg2: memref<256x64xf32, #tpu.memory_space<vmem>>, %arg3: memref<4x256xf32, #tpu.memory_space<vmem>>, %arg4: memref<1xf32, #tpu.memory_space<smem>>, %arg5: memref<1x4x256xf32, #tpu.memory_space<vmem>>) attributes {dimension_semantics = [#tpu.dimension_semantics<parallel>], iteration_bounds = array<i64: 2>, scalar_prefetch = 0 : i64, scratch_operands = 0 : i64, tpu.core_type = #tpu.core_type<tc>, window_params = [{transform_indices = @transform_0, window_bounds = array<i64: 1, 4, 256>}, {pipeline_mode = #tpu.pipeline_mode<synchronous>, transform_indices = @transform_1, window_bounds = array<i64: 256, 64>}, {pipeline_mode = #tpu.pipeline_mode<synchronous>, transform_indices = @transform_2, window_bounds = array<i64: 4, 256>}, {transform_indices = @transform_3, window_bounds = array<i64: 1>}, {transform_indices = @transform_4, window_bounds = array<i64: 1, 4, 256>}]} {
    %c0 = arith.constant 0 : index
    %c0_0 = arith.constant 0 : index
    %c0_1 = arith.constant 0 : index
    %0 = vector.load %arg1[%c0, %c0_0, %c0_1] : memref<1x4x256xf32, #tpu.memory_space<vmem>>, vector<1x4x256xf32>
    %1 = vector.shape_cast %0 : vector<1x4x256xf32> to vector<4x256xf32>
    %c0_2 = arith.constant 0 : index
    %c0_3 = arith.constant 0 : index
    %2 = vector.load %arg2[%c0_2, %c0_3] : memref<256x64xf32, #tpu.memory_space<vmem>>, vector<256x64xf32>
    %cst = arith.constant dense<0.000000e+00> : vector<4x64xf32>
    %3 = tpu.matmul %1, %2, %cst {dimension_numbers = #tpu.dot_dimension_numbers<[1], [0], [0], [1], [0, 0, 1, 1], [], []>} : vector<4x256xf32>, vector<256x64xf32>, vector<4x64xf32> -> vector<4x64xf32>
    %4 = tpu.concatenate %3, %3, %3, %3 in 1 : vector<4x64xf32>, vector<4x64xf32>, vector<4x64xf32>, vector<4x64xf32> -> vector<4x256xf32>
    %c0_4 = arith.constant 0 : index
    %c0_5 = arith.constant 0 : index
    %5 = vector.load %arg3[%c0_4, %c0_5] : memref<4x256xf32, #tpu.memory_space<vmem>>, vector<4x256xf32>
    %6 = arith.mulf %5, %4 : vector<4x256xf32>
    %cst_6 = arith.constant dense<0.000000e+00> : vector<256xf32>
    %7 = vector.multi_reduction <add>, %6, %cst_6 [0] : vector<4x256xf32> to vector<256xf32>
    %8 = vector.shape_cast %7 : vector<256xf32> to vector<1x256xf32>
    %c0_7 = arith.constant 0 : index
    %9 = memref.load %arg4[%c0_7] : memref<1xf32, #tpu.memory_space<smem>>
    %10 = vector.broadcast %9 : f32 to vector<1x256xf32>
    %11 = arith.addf %8, %10 : vector<1x256xf32>
    %12 = vector.broadcast %11 : vector<1x256xf32> to vector<4x256xf32>
    %13 = arith.mulf %1, %12 : vector<4x256xf32>
    %cst_8 = arith.constant dense<0.000000e+00> : vector<4xf32>
    %14 = vector.multi_reduction <add>, %13, %cst_8 [1] : vector<4x256xf32> to vector<4xf32>
    %15 = vector.shape_cast %14 : vector<4xf32> to vector<4x1xf32>
    %16 = vector.broadcast %15 : vector<4x1xf32> to vector<4x256xf32>
    %17 = arith.addf %1, %16 : vector<4x256xf32>
    %18 = vector.shape_cast %17 : vector<4x256xf32> to vector<1x4x256xf32>
    %c0_9 = arith.constant 0 : index
    %c0_10 = arith.constant 0 : index
    %c0_11 = arith.constant 0 : index
    %19 = vector.load %arg5[%c0_9, %c0_10, %c0_11] : memref<1x4x256xf32, #tpu.memory_space<vmem>>, vector<1x4x256xf32>
    tpu.vector_store %arg5[%c0_9, %c0_10, %c0_11], %18 {strides = array<i32>} : memref<1x4x256xf32, #tpu.memory_space<vmem>>, vector<1x4x256xf32>,
    return
  }
  func.func @transform_0(%arg0: i32) -> (i32, i32, i32) {
    %c0_i32 = arith.constant 0 : i32
    %c0_i32_0 = arith.constant 0 : i32
    %c0_i32_1 = arith.constant 0 : i32
    return %arg0, %c0_i32, %c0_i32_0 : i32, i32, i32
  }
  func.func @transform_1(%arg0: i32) -> (i32, i32) {
    %c0_i32 = arith.constant 0 : i32
    %c0_i32_0 = arith.constant 0 : i32
    %c0_i32_1 = arith.constant 0 : i32
    return %c0_i32, %c0_i32_0 : i32, i32
  }
  func.func @transform_2(%arg0: i32) -> (i32, i32) {
    %c0_i32 = arith.constant 0 : i32
    %c0_i32_0 = arith.constant 0 : i32
    %c0_i32_1 = arith.constant 0 : i32
    return %c0_i32, %c0_i32_0 : i32, i32
  }
  func.func @transform_3(%arg0: i32) -> i32 {
    %c0_i32 = arith.constant 0 : i32
    %c0_i32_0 = arith.constant 0 : i32
    return %c0_i32 : i32
  }
  func.func @transform_4(%arg0: i32) -> (i32, i32, i32) {
    %c0_i32 = arith.constant 0 : i32
    %c0_i32_0 = arith.constant 0 : i32
    %c0_i32_1 = arith.constant 0 : i32
    return %arg0, %c0_i32, %c0_i32_0 : i32, i32, i32
  }
}

module attributes {stable_mosaic.version = 11 : i64} {
  func.func @_fused_kernel(%arg0: i32, %arg1: memref<1x4x256xf32, #tpu.memory_space<vmem>>, %arg2: memref<256x64xf32, #tpu.memory_space<vmem>>, %arg3: memref<4x256xf32, #tpu.memory_space<vmem>>, %arg4: memref<1xf32, #tpu.memory_space<smem>>, %arg5: memref<1x4x256xf32, #tpu.memory_space<vmem>>) attributes {dimension_semantics = [#tpu.dimension_semantics<parallel>], iteration_bounds = array<i64: 2>, scalar_prefetch = 0 : i64, scratch_operands = 0 : i64, tpu.core_type = #tpu.core_type<tc>, window_params = [{transform_indices = @transform_0, window_bounds = array<i64: 1, 4, 256>}, {pipeline_mode = #tpu.pipeline_mode<synchronous>, transform_indices = @transform_1, window_bounds = array<i64: 256, 64>}, {pipeline_mode = #tpu.pipeline_mode<synchronous>, transform_indices = @transform_2, window_bounds = array<i64: 4, 256>}, {transform_indices = @transform_3, window_bounds = array<i64: 1>}, {transform_indices = @transform_4, window_bounds = array<i64: 1, 4, 256>}]} {
    %c0 = arith.constant 0 : index
    %c0_0 = arith.constant 0 : index
    %c0_1 = arith.constant 0 : index
    %0 = vector.load %arg1[%c0, %c0_0, %c0_1] : memref<1x4x256xf32, #tpu.memory_space<vmem>>, vector<1x4x256xf32>
    %1 = vector.shape_cast %0 : vector<1x4x256xf32> to vector<4x256xf32>
    %c0_2 = arith.constant 0 : index
    %c0_3 = arith.constant 0 : index
    %2 = vector.load %arg2[%c0_2, %c0_3] : memref<256x64xf32, #tpu.memory_space<vmem>>, vector<256x64xf32>
    %cst = arith.constant dense<0.000000e+00> : vector<4x64xf32>
    %3 = tpu.matmul %1, %2, %cst {dimension_numbers = #tpu.dot_dimension_numbers<[1], [0], [0], [1], [0, 0, 1, 1], [], []>} : vector<4x256xf32>, vector<256x64xf32>, vector<4x64xf32> -> vector<4x64xf32>
    %4 = tpu.concatenate %3, %3, %3, %3 in 1 : vector<4x64xf32>, vector<4x64xf32>, vector<4x64xf32>, vector<4x64xf32> -> vector<4x256xf32>
    %c0_4 = arith.constant 0 : index
    %c0_5 = arith.constant 0 : index
    %5 = vector.load %arg3[%c0_4, %c0_5] : memref<4x256xf32, #tpu.memory_space<vmem>>, vector<4x256xf32>
    %6 = arith.mulf %5, %4 : vector<4x256xf32>
    %cst_6 = arith.constant dense<0.000000e+00> : vector<256xf32>
    %7 = vector.multi_reduction <add>, %6, %cst_6 [0] : vector<4x256xf32> to vector<256xf32>
    %8 = vector.shape_cast %7 : vector<256xf32> to vector<1x256xf32>
    %c0_7 = arith.constant 0 : index
    %9 = memref.load %arg4[%c0_7] : memref<1xf32, #tpu.memory_space<smem>>
    %10 = vector.broadcast %9 : f32 to vector<1x256xf32>
    %11 = arith.addf %8, %10 : vector<1x256xf32>
    %12 = vector.broadcast %11 : vector<1x256xf32> to vector<4x256xf32>
    %13 = arith.mulf %1, %12 : vector<4x256xf32>
    %cst_8 = arith.constant dense<0.000000e+00> : vector<4xf32>
    %14 = vector.multi_reduction <add>, %13, %cst_8 [1] : vector<4x256xf32> to vector<4xf32>
    %15 = vector.shape_cast %14 : vector<4xf32> to vector<4x1xf32>
    %16 = vector.broadcast %15 : vector<4x1xf32> to vector<4x256xf32>
    %17 = arith.addf %1, %16 : vector<4x256xf32>
    %18 = vector.shape_cast %17 : vector<4x256xf32> to vector<1x4x256xf32>
    %c0_9 = arith.constant 0 : index
    %c0_10 = arith.constant 0 : index
    %c0_11 = arith.constant 0 : index
    %19 = vector.load %arg5[%c0_9, %c0_10, %c0_11] : memref<1x4x256xf32, #tpu.memory_space<vmem>>, vector<1x4x256xf32>
    tpu.vector_store %arg5[%c0_9, %c0_10, %c0_11], %18 {strides = array<i32>} : memref<1x4x256xf32, #tpu.memory_space<vmem>>, vector<1x4x256xf32>,
    return
  }
  func.func @transform_0(%arg0: i32) -> (i32, i32, i32) {
    %c0_i32 = arith.constant 0 : i32
    %c0_i32_0 = arith.constant 0 : i32
    %c0_i32_1 = arith.constant 0 : i32
    return %arg0, %c0_i32, %c0_i32_0 : i32, i32, i32
  }
  func.func @transform_1(%arg0: i32) -> (i32, i32) {
    %c0_i32 = arith.constant 0 : i32
    %c0_i32_0 = arith.constant 0 : i32
    %c0_i32_1 = arith.constant 0 : i32
    return %c0_i32, %c0_i32_0 : i32, i32
  }
  func.func @transform_2(%arg0: i32) -> (i32, i32) {
    %c0_i32 = arith.constant 0 : i32
    %c0_i32_0 = arith.constant 0 : i32
    %c0_i32_1 = arith.constant 0 : i32
    return %c0_i32, %c0_i32_0 : i32, i32
  }
  func.func @transform_3(%arg0: i32) -> i32 {
    %c0_i32 = arith.constant 0 : i32
    %c0_i32_0 = arith.constant 0 : i32
    return %c0_i32 : i32
  }
  func.func @transform_4(%arg0: i32) -> (i32, i32, i32) {
    %c0_i32 = arith.constant 0 : i32
    %c0_i32_0 = arith.constant 0 : i32
    %c0_i32_1 = arith.constant 0 : i32
    return %arg0, %c0_i32, %c0_i32_0 : i32, i32, i32
  }
}

module attributes {stable_mosaic.version = 11 : i64} {
  func.func @_looped_kernel(%arg0: i32, %arg1: memref<1x4x256xf32, #tpu.memory_space<vmem>>, %arg2: memref<256x64xf32, #tpu.memory_space<vmem>>, %arg3: memref<4x4xf32, #tpu.memory_space<vmem>>, %arg4: memref<1xf32, #tpu.memory_space<smem>>, %arg5: memref<1x4x256xf32, #tpu.memory_space<vmem>>) attributes {dimension_semantics = [#tpu.dimension_semantics<parallel>], iteration_bounds = array<i64: 2>, scalar_prefetch = 0 : i64, scratch_operands = 0 : i64, tpu.core_type = #tpu.core_type<tc>, window_params = [{transform_indices = @transform_0, window_bounds = array<i64: 1, 4, 256>}, {pipeline_mode = #tpu.pipeline_mode<synchronous>, transform_indices = @transform_1, window_bounds = array<i64: 256, 64>}, {pipeline_mode = #tpu.pipeline_mode<synchronous>, transform_indices = @transform_2, window_bounds = array<i64: 4, 4>}, {transform_indices = @transform_3, window_bounds = array<i64: 1>}, {transform_indices = @transform_4, window_bounds = array<i64: 1, 4, 256>}]} {
    %c0 = arith.constant 0 : index
    %c0_0 = arith.constant 0 : index
    %c0_1 = arith.constant 0 : index
    %0 = vector.load %arg1[%c0, %c0_0, %c0_1] : memref<1x4x256xf32, #tpu.memory_space<vmem>>, vector<1x4x256xf32>
    %1 = vector.shape_cast %0 : vector<1x4x256xf32> to vector<4x256xf32>
    %c0_2 = arith.constant 0 : index
    %c0_3 = arith.constant 0 : index
    %2 = vector.load %arg2[%c0_2, %c0_3] : memref<256x64xf32, #tpu.memory_space<vmem>>, vector<256x64xf32>
    %cst = arith.constant dense<0.000000e+00> : vector<4x64xf32>
    %3 = tpu.matmul %1, %2, %cst {dimension_numbers = #tpu.dot_dimension_numbers<[1], [0], [0], [1], [0, 0, 1, 1], [], []>} : vector<4x256xf32>, vector<256x64xf32>, vector<4x64xf32> -> vector<4x64xf32>
    %c0_4 = arith.constant 0 : index
    %c0_5 = arith.constant 0 : index
    %4 = vector.load %arg3[%c0_4, %c0_5] : memref<4x4xf32, #tpu.memory_space<vmem>>, vector<4x4xf32>
    %cst_6 = arith.constant dense<0.000000e+00> : vector<4x64xf32>
    %5 = tpu.matmul %4, %3, %cst_6 {dimension_numbers = #tpu.dot_dimension_numbers<[1], [0], [0], [1], [0, 0, 1, 1], [], []>} : vector<4x4xf32>, vector<4x64xf32>, vector<4x64xf32> -> vector<4x64xf32>
    %c0_7 = arith.constant 0 : index
    %6 = memref.load %arg4[%c0_7] : memref<1xf32, #tpu.memory_space<smem>>
    %7 = vector.broadcast %6 : f32 to vector<4x64xf32>
    %8 = arith.addf %5, %7 : vector<4x64xf32>
    %cst_8 = arith.constant 0.000000e+00 : f32
    %9 = vector.broadcast %cst_8 : f32 to vector<4x1xf32>
    %c0_9 = arith.constant 0 : index
    %c0_10 = arith.constant 0 : index
    %c0_11 = arith.constant 0 : index
    %10 = vector.load %arg1[%c0_9, %c0_10, %c0_11] : memref<1x4x256xf32, #tpu.memory_space<vmem>>, vector<1x4x64xf32>
    %11 = vector.shape_cast %10 : vector<1x4x64xf32> to vector<4x64xf32>
    %12 = vector.extract_strided_slice %8 {offsets = [0, 0], sizes = [1, 64], strides = [1, 1]} : vector<4x64xf32> to vector<1x64xf32>
    %13 = vector.broadcast %12 : vector<1x64xf32> to vector<4x64xf32>
    %14 = arith.mulf %11, %13 : vector<4x64xf32>
    %cst_12 = arith.constant dense<0.000000e+00> : vector<4xf32>
    %15 = vector.multi_reduction <add>, %14, %cst_12 [1] : vector<4x64xf32> to vector<4xf32>
    %16 = vector.shape_cast %15 : vector<4xf32> to vector<4x1xf32>
    %17 = arith.addf %9, %16 : vector<4x1xf32>
    %c0_13 = arith.constant 0 : index
    %c0_14 = arith.constant 0 : index
    %c64 = arith.constant 64 : index
    %18 = vector.load %arg1[%c0_13, %c0_14, %c64] : memref<1x4x256xf32, #tpu.memory_space<vmem>>, vector<1x4x64xf32>
    %19 = vector.shape_cast %18 : vector<1x4x64xf32> to vector<4x64xf32>
    %20 = vector.extract_strided_slice %8 {offsets = [1, 0], sizes = [1, 64], strides = [1, 1]} : vector<4x64xf32> to vector<1x64xf32>
    %21 = vector.broadcast %20 : vector<1x64xf32> to vector<4x64xf32>
    %22 = arith.mulf %19, %21 : vector<4x64xf32>
    %cst_15 = arith.constant dense<0.000000e+00> : vector<4xf32>
    %23 = vector.multi_reduction <add>, %22, %cst_15 [1] : vector<4x64xf32> to vector<4xf32>
    %24 = vector.shape_cast %23 : vector<4xf32> to vector<4x1xf32>
    %25 = arith.addf %17, %24 : vector<4x1xf32>
    %c0_16 = arith.constant 0 : index
    %c0_17 = arith.constant 0 : index
    %c128 = arith.constant 128 : index
    %26 = vector.load %arg1[%c0_16, %c0_17, %c128] : memref<1x4x256xf32, #tpu.memory_space<vmem>>, vector<1x4x64xf32>
    %27 = vector.shape_cast %26 : vector<1x4x64xf32> to vector<4x64xf32>
    %28 = vector.extract_strided_slice %8 {offsets = [2, 0], sizes = [1, 64], strides = [1, 1]} : vector<4x64xf32> to vector<1x64xf32>
    %29 = vector.broadcast %28 : vector<1x64xf32> to vector<4x64xf32>
    %30 = arith.mulf %27, %29 : vector<4x64xf32>
    %cst_18 = arith.constant dense<0.000000e+00> : vector<4xf32>
    %31 = vector.multi_reduction <add>, %30, %cst_18 [1] : vector<4x64xf32> to vector<4xf32>
    %32 = vector.shape_cast %31 : vector<4xf32> to vector<4x1xf32>
    %33 = arith.addf %25, %32 : vector<4x1xf32>
    %c0_19 = arith.constant 0 : index
    %c0_20 = arith.constant 0 : index
    %c192 = arith.constant 192 : index
    %34 = vector.load %arg1[%c0_19, %c0_20, %c192] : memref<1x4x256xf32, #tpu.memory_space<vmem>>, vector<1x4x64xf32>
    %35 = vector.shape_cast %34 : vector<1x4x64xf32> to vector<4x64xf32>
    %36 = vector.extract_strided_slice %8 {offsets = [3, 0], sizes = [1, 64], strides = [1, 1]} : vector<4x64xf32> to vector<1x64xf32>
    %37 = vector.broadcast %36 : vector<1x64xf32> to vector<4x64xf32>
    %38 = arith.mulf %35, %37 : vector<4x64xf32>
    %cst_21 = arith.constant dense<0.000000e+00> : vector<4xf32>
    %39 = vector.multi_reduction <add>, %38, %cst_21 [1] : vector<4x64xf32> to vector<4xf32>
    %40 = vector.shape_cast %39 : vector<4xf32> to vector<4x1xf32>
    %41 = arith.addf %33, %40 : vector<4x1xf32>
    %42 = vector.broadcast %41 : vector<4x1xf32> to vector<4x256xf32>
    %43 = arith.addf %1, %42 : vector<4x256xf32>
    %44 = vector.shape_cast %43 : vector<4x256xf32> to vector<1x4x256xf32>
    %c0_22 = arith.constant 0 : index
    %c0_23 = arith.constant 0 : index
    %c0_24 = arith.constant 0 : index
    %45 = vector.load %arg5[%c0_22, %c0_23, %c0_24] : memref<1x4x256xf32, #tpu.memory_space<vmem>>, vector<1x4x256xf32>
    tpu.vector_store %arg5[%c0_22, %c0_23, %c0_24], %44 {strides = array<i32>} : memref<1x4x256xf32, #tpu.memory_space<vmem>>, vector<1x4x256xf32>,
    return
  }
  func.func @transform_0(%arg0: i32) -> (i32, i32, i32) {
    %c0_i32 = arith.constant 0 : i32
    %c0_i32_0 = arith.constant 0 : i32
    %c0_i32_1 = arith.constant 0 : i32
    return %arg0, %c0_i32, %c0_i32_0 : i32, i32, i32
  }
  func.func @transform_1(%arg0: i32) -> (i32, i32) {
    %c0_i32 = arith.constant 0 : i32
    %c0_i32_0 = arith.constant 0 : i32
    %c0_i32_1 = arith.constant 0 : i32
    return %c0_i32, %c0_i32_0 : i32, i32
  }
  func.func @transform_2(%arg0: i32) -> (i32, i32) {
    %c0_i32 = arith.constant 0 : i32
    %c0_i32_0 = arith.constant 0 : i32
    %c0_i32_1 = arith.constant 0 : i32
    return %c0_i32, %c0_i32_0 : i32, i32
  }
  func.func @transform_3(%arg0: i32) -> i32 {
    %c0_i32 = arith.constant 0 : i32
    %c0_i32_0 = arith.constant 0 : i32
    return %c0_i32 : i32
  }
  func.func @transform_4(%arg0: i32) -> (i32, i32, i32) {
    %c0_i32 = arith.constant 0 : i32
    %c0_i32_0 = arith.constant 0 : i32
    %c0_i32_1 = arith.constant 0 : i32
    return %arg0, %c0_i32, %c0_i32_0 : i32, i32, i32
  }
}

</mosaic_0001>

<bundles_post_ra>
// kernel: tpu_custom_call.1
= control target key start
LH: loop header
LB: loop body
LE: loop exit
PB: predicated region body
PF: predicated region fallthrough
CT: control target
= control target key end

     0   :  { %s758_s0 = inlined_call_operand.vmem [shape: f32[2,4,256], index: 0, kind: input, shape index: {}]   ;;  %s759_s1 = inlined_call_operand.vmem [shape: f32[256,64], index: 1, kind: input, shape index: {}]   ;;  %s760_s2 = inlined_call_operand.vmem [shape: f32[4,256], index: 2, kind: input, shape index: {}]   ;;  %s761_s3 = inlined_call_operand.<no memory space> [shape: f32[1], index: 3, kind: input, shape index: {}]   ;;  %s762_s4 = inlined_call_operand.hbm [shape: f32[2,4,256], index: 4, kind: output, shape index: {}]  }
   0x1   :  { %9 = sst [smem:[#allocation2]] %s761_s3 }
   0x2   :  { %10 = vsyncpa [#allocation4], 0 }
   0x3   :  { %12 = vsyncpa [#allocation4 + $0x1], 0  ;;  %s563_s17 = smov 0   ;;  %s565_s18 = smov 0  }
   0x4   :  { %s567_s19 = smov 0   ;;  %s569_s20 = smov 0  }
   0x5 LB: > { %s584_s3 = sadd.s32 4294967295, %s531_s20   ;;  %s414_s21 = sadd.s32 4294967294, %s531_s20   ;;  %s531_s20 = sphi %s569_s20, %s768_s20   ;;  %s527_s19 = sphi %s567_s19, %s767_s19   ;;  %s523_s18 = sphi %s565_s18, %s766_s18   ;;  %s519_s17 = sphi %s563_s17, %s765_s17  }
   0x6   : > { %s588_s22 = sadd.s32 1, %s531_s20   ;;  %s114_s23 = sadd.s32 1, %s527_s19 }
   0x7   : > { %s111_s24 = ssub.s32 %s531_s20, %s588_s22  ;;  %p124_p0 = scmp.ne.s32.totalorder %s527_s19, %s523_s18 }
   0x8   : > { %p112_p1 = scmp.eq.s32.totalorder %s111_s24, 0  ;;  %p125_p2 = scmp.eq.s32.totalorder %s584_s3, 1 }
   0x9   : > { %p130_p3 = scmp.ne.s32.totalorder %s523_s18, %s519_s17  ;;  %p131_p4 = scmp.eq.s32.totalorder %s414_s21, 1 }
   0xa   : > { %s599_s25 = scalar_select %p112_p1, %s527_s19, %s114_s23  }
   0xb   : > { %p601_p5 = por %p125_p2, %p124_p0  ;;  %p605_p6 = por %p131_p4, %p130_p3 }
   0xc   : > { %p417_p7 = scmp.ge.s32.totalorder %s531_s20, 1  ;;  %p166_p8 = scmp.lt.s32.totalorder %s531_s20, 3 }
   0xe   : > { %p167_p9 = pnand %p417_p7, %p166_p8 }
   0xf   : > { %p192_p10 = scmp.lt.s32.totalorder (!%p167_p9), %s584_s3, 1  ;;  %s533_s21 = smov (!%p167_p9), 64  }
  0x10   : > { %170 = sbr.rel (%p167_p9) target bundleno = 465 (0x1d1), region = 36  ;;  %s309_s28 = sld [smem:[#allocation2]] (!%p167_p9) }
  0x11   : > { %s189_s29 = sand.u32 (!%p167_p9), 1, %s523_s18   ;;  %s427_s5 = sshll.u32 (!%p167_p9), %s584_s3, 3 }
  0x12   : > { %s418_s30 = sshll.u32 (!%p167_p9), %s189_s29, 3  ;;  %s339_s12 = scalar_lea.sflag (!%p167_p9), [#allocation4], %s189_s29 }
  0x13   : > { %s191_s9 = scalar_lea.vmem (!%p167_p9), [#allocation3], %s418_s30  ;;  %s489_s16 = scalar_lea.hbm (!%p167_p9), %s762_s4, 16 }
  0x14   : > { %s352_s10 = sshll.u32 (!%p167_p9), %s191_s9, 4  ;;  %s353_s10 = int_to_ptr.vmem [resolvable:$true] %s352_s10 }
  0x15   : > { %v213_v0 = vld [vmem:[%s759_s1 + $0x78] sm:$0xff]  ;;  %v212_v2 = vld [vmem:[%s759_s1 + $0x70] sm:$0xff]  ;;  %v211_v4 = vld [vmem:[%s759_s1 + $0x68] sm:$0xff]  ;;  %s193_s14 = scalar_select %p192_p10, %s584_s3, 1  ;;  %vm280_vm0 = vcmask 523264   ;;  %vm285_vm1 = vcmask 1043456  }
  0x16   : > { %v229_v1 = vld [vmem:[%s759_s1 + $0xf8] sm:$0xff]  ;;  %236 = vmatpush.msra.mxu0 %v213_v0  ;;  %v228_v3 = vld [vmem:[%s759_s1 + $0xf0] sm:$0xff]  ;;  %v227_v5 = vld [vmem:[%s759_s1 + $0xe8] sm:$0xff]  ;;  %v310_v58 = vstv %s309_s28 }
  0x17   : > { %256 = vmatpush.msra.mxu1 %v229_v1  ;;  %v210_v6 = vld [vmem:[%s759_s1 + $0x60] sm:$0xff]  ;;  %s426_s24 = sshll.u32 %s193_s14, 3  ;;  %v209_v8 = vld [vmem:[%s759_s1 + $0x58] sm:$0xff]  ;;  %v208_v10 = vld [vmem:[%s759_s1 + $0x50] sm:$0xff] }
  0x18   : > { %237 = vmatpush.msra.mxu0 %v212_v2  ;;  %v226_v7 = vld [vmem:[%s759_s1 + $0xe0] sm:$0xff]  ;;  %v225_v9 = vld [vmem:[%s759_s1 + $0xd8] sm:$0xff]  ;;  %s196_s8 = scalar_lea.vmem %s758_s0, %s426_s24  ;;  %v224_v11 = vld [vmem:[%s759_s1 + $0xd0] sm:$0xff] }
  0x19   : > { %257 = vmatpush.msra.mxu1 %v228_v3  ;;  %v207_v12 = vld [vmem:[%s759_s1 + $0x48] sm:$0xff]  ;;  %v658_v14 = vld [vmem:[%s196_s8] sm:$0xff]  ;;  %v205_v17 = vld [vmem:[%s759_s1 + $0x38] sm:$0xff]  ;;  %s350_s8 = scalar_lea.hbm %s762_s4, %s427_s5 }
  0x1a   : > { %238 = vmatpush.msra.mxu0 %v211_v4  ;;  %v223_v13 = vld [vmem:[%s759_s1 + $0xc8] sm:$0xff]  ;;  %231 = vst [vmem:[#allocation1] ss:$2 sm:$0xff] %v658_v14  ;;  %v206_v15 = vld [vmem:[%s759_s1 + $0x40] sm:$0xff]  ;;  %v221_v18 = vld [vmem:[%s759_s1 + $0xb8] sm:$0xff]  ;;  %s354_s11 = sshll.u32 %s350_s8, 4  ;;  %s355_s11 = int_to_ptr.hbm [resolvable:$true] %s354_s11 }
  0x1b   : > { %258 = vmatpush.msra.mxu1 %v227_v5  ;;  %v222_v16 = vld [vmem:[%s759_s1 + $0xc0] sm:$0xff]  ;;  %v204_v19 = vld [vmem:[%s759_s1 + $0x30] sm:$0xff]  ;;  %v203_v21 = vld [vmem:[%s759_s1 + $0x28] sm:$0xff]  ;;  %s483_s13 = sshra.s32 %s355_s11, 4  ;;  %s484_s13 = int_to_ptr.hbm [resolvable:$true] %s483_s13 }
  0x1c   : > { %239 = vmatpush.msra.mxu0 %v210_v6  ;;  %v220_v20 = vld [vmem:[%s759_s1 + $0xb0] sm:$0xff]  ;;  %v219_v22 = vld [vmem:[%s759_s1 + $0xa8] sm:$0xff]  ;;  %v202_v23 = vld [vmem:[%s759_s1 + $0x20] sm:$0xff]  ;;  %s485_s3 = scalar_lea.hbm %s484_s13, 8  ;;  %p490_p0 = scmp.lt.s32.totalorder %s484_s13, %s762_s4 }
  0x1d   : > { %259 = vmatpush.msra.mxu1 %v226_v7  ;;  %v218_v24 = vld [vmem:[%s759_s1 + $0xa0] sm:$0xff]  ;;  %v201_v25 = vld [vmem:[%s759_s1 + $0x18] sm:$0xff]  ;;  %v200_v27 = vld [vmem:[%s759_s1 + $0x10] sm:$0xff]  ;;  %v534_v7 = vmov 839922192   ;;  %p486_p11 = scmp.ne.s32.totalorder %s484_s13, %s485_s3  ;;  %p491_p1 = scmp.lt.s32.totalorder %s489_s16, %s485_s3 }
  0x1e   : > { %240 = vmatpush.msra.mxu0 %v209_v8  ;;  %v217_v26 = vld [vmem:[%s759_s1 + $0x98] sm:$0xff]  ;;  %v216_v28 = vld [vmem:[%s759_s1 + $0x90] sm:$0xff]  ;;  %v199_v29 = vld [vmem:[%s759_s1 + $0x8] sm:$0xff]  ;;  %v332_v8 = vunpack.c.l.s4 %v534_v7 }
  0x1f   : > { %260 = vmatpush.msra.mxu1 %v225_v9  ;;  %v215_v30 = vld [vmem:[%s759_s1 + $0x88] sm:$0xff]  ;;  %v198_v31 = vld [vmem:[%s759_s1] sm:$0xff]  ;;  %p487_p12 = pnand %p486_p11, %p601_p5  ;;  %p492_p2 = por %p491_p1, %p490_p0 }
  0x20   : > { %241 = vmatpush.msra.mxu0 %v208_v10  ;;  %v214_v32 = vld [vmem:[%s759_s1 + $0x80] sm:$0xff]  ;;  %v333_v9 = vunpack.c.0.s8 %v332_v8 }
  0x21   : > { %261 = vmatpush.msra.mxu1 %v224_v11  ;;  %v232_v33 = vld.sshfl [vmem:[#allocation1] sm:$0xff pattern:$0x75316420]  ;;  %v233_v34 = vld.sshfl [vmem:[#allocation1 + $0x8] sm:$0xff pattern:$0x75316420]  ;;  %p488_p13 = pneg %p487_p12 }
  0x22   : > { %242 = vmatpush.msra.mxu0 %v207_v12  ;;  %v282_v40 = vld [vmem:[%s760_s2] sm:$0xff] }
  0x23   : > { %262 = vmatpush.msra.mxu1 %v223_v13  ;;  %p493_p3 = pnand %p492_p2, %p488_p13 }
  0x24   : > { %243 = vmatpush.msra.mxu0 %v206_v15 }
  0x25   : > { %263 = vmatpush.msra.mxu1 %v222_v16 }
  0x26   : > { %244 = vmatpush.msra.mxu0 %v205_v17 }
  0x27   : > { %264 = vmatpush.msra.mxu1 %v221_v18 }
  0x28   : > { %245 = vmatpush.msra.mxu0 %v204_v19 }
  0x29   : > { %265 = vmatpush.msra.mxu1 %v220_v20 }
  0x2a   : > { %246 = vmatpush.msra.mxu0 %v203_v21 }
  0x2b   : > { %266 = vmatpush.msra.mxu1 %v219_v22 }
  0x2c   : > { %247 = vmatpush.msra.mxu0 %v202_v23 }
  0x2d   : > { %267 = vmatpush.msra.mxu1 %v218_v24 }
  0x2e   : > { %248 = vmatpush.msra.mxu0 %v201_v25 }
  0x2f   : > { %268 = vmatpush.msra.mxu1 %v217_v26 }
  0x30   : > { %249 = vmatpush.msra.mxu0 %v200_v27 }
  0x31   : > { %269 = vmatpush.msra.mxu1 %v216_v28 }
  0x32   : > { %250 = vmatpush.msra.mxu0 %v199_v29 }
  0x33   : > { %270 = vmatpush.msra.mxu1 %v215_v30 }
  0x34   : > { %251 = vmatpush.msra.mxu0 %v198_v31 }
  0x35   : > { %271 = vmatpush.msra.mxu1 %v214_v32  ;;  %252 = vmatmul.f32.vlgmr.msra.gmra.mxu0 %v232_v33 }
  0x36   : > { %272 = vmatmul.f32.vlgmr.msra.gmra.mxu1 %v233_v34 }
  0xb2   : > { %v253_v35 = vpop.f32.mrf.mxu0 }
  0xb3   : > { %v273_v36 = vpop.f32.mrf.mxu1 }
  0xb4   : > { %v274_v37 = vadd.f32 %v273_v36, %v253_v35 }
  0xb6   : > { %277 = vrot.lane.b32.xlu0 %v274_v37, %s533_s21 }
 0x128   : > { %v278_v38 = vpop.permute.xlu0 %277 }
 0x129   : > { %v281_v39 = vsel %vm280_vm0, %v274_v37, %v278_v38 }
 0x12a   : > { %v284_v41 = vrot.slane %v281_v39, 4 }
 0x12c   : > { %v286_v42 = vsel %vm285_vm1, %v281_v39, %v284_v41 }
 0x12d   : > { %v288_v43 = vmul.f32 %v286_v42, %v282_v40 }
 0x12f   : > { %290 = vst [vmem:[#allocation1] ss:$2 sm:$0xff] %v288_v43 }
 0x136   : > { %v291_v44 = vld.sshfl [vmem:[#allocation1] sm:$0xff pattern:$0x75316420]  ;;  %v292_v45 = vld.sshfl [vmem:[#allocation1 + $0x8] sm:$0xff pattern:$0x75316420] }
 0x137   : > { %v295_v46 = vsel %vm285_vm1, %v291_v44, 0.0  ;;  %v302_v47 = vsel %vm285_vm1, %v292_v45, 0.0 }
 0x138   : > { %v296_v48 = vrot.slane %v295_v46, 4  ;;  %v303_v49 = vrot.slane %v302_v47, 4 }
 0x13a   : > { %v297_v50 = vadd.f32 %v296_v48, %v295_v46  ;;  %v304_v51 = vadd.f32 %v303_v49, %v302_v47 }
 0x13c   : > { %v298_v52 = vrot.slane %v297_v50, 2  ;;  %v305_v53 = vrot.slane %v304_v51, 2 }
 0x13e   : > { %v299_v54 = vadd.f32 %v298_v52, %v297_v50  ;;  %v306_v55 = vadd.f32 %v305_v53, %v304_v51 }
 0x140   : > { %v300_v56 = vrot.slane %v299_v54, 1  ;;  %v307_v57 = vrot.slane %v306_v55, 1 }
 0x142   : > { %v301_v59 = vadd.f32 %v300_v56, %v299_v54  ;;  %v308_v60 = vadd.f32 %v307_v57, %v306_v55 }
 0x144   : > { %v312_v61 = vadd.f32 %v310_v58, %v308_v60  ;;  %v311_v62 = vadd.f32 %v310_v58, %v301_v59 }
 0x146   : > { %v315_v63 = vrot.slane %v312_v61, 4 }
 0x148   : > { %v316_v0 = vsel %vm285_vm1, %v311_v62, %v315_v63 }
 0x149   : > { %v318_v1 = vmul.f32 %v316_v0, %v658_v14 }
 0x14b   : > { %320 = vst [vmem:[#allocation1] ss:$2 sm:$0xff] %v318_v1 }
 0x152   : > { %v321_v2 = vld.sshfl [vmem:[#allocation1] sm:$0xff pattern:$0x75316420]  ;;  %v322_v3 = vld.sshfl [vmem:[#allocation1 + $0x8] sm:$0xff pattern:$0x75316420] }
 0x153   : > { %v325_v4 = vsel %vm285_vm1, %v321_v2, 0.0  ;;  %v326_v5 = vsel %vm285_vm1, %v322_v3, 0.0 }
 0x154   : > { %v327_v6 = vadd.f32 %v326_v5, %v325_v4 }
 0x156   : > { %328 = vadd.xlane.f32.xlu0 %v327_v6 }
 0x1c9   : > { %v329_v10 = vpop.xlane.xlu0 %328 }
 0x1ca   : > { %v334_v11 = vperm.slane %v329_v10, %v333_v9 }
 0x1cc   : > { %v336_v12 = vadd.f32 %v334_v11, %v658_v14 }
 0x1ce   : > { %337 = vst [vmem:[%s191_s9] sm:$0xff] %v336_v12 }
 0x1cf   : > { %496 = shalt.err (!%p493_p3)
}
 0x1d0   : > { %428 = dma.vmem_to_hbm [thread:$0]  (%p601_p5), %s353_s10, 128, %s355_s11, %s339_s12  }
 0x1d1 PF: > { %p434_p4 = scmp.ge.s32.totalorder %s531_s20, 2  ;;  %s366_s24 = sand.u32 1, %s519_s17  }
 0x1d2   : > { %s367_s28 = scalar_lea.sflag [#allocation4], %s366_s24 }
 0x1d3   : > { %p431_p7 = pnand %p434_p4, %p605_p6 }
 0x1d5   : > { %p432_p8 = pneg %p431_p7 }
 0x1d7   : > { %514 = dma.done.wait (%p432_p8), %s367_s28, 128  }
 0x1d8   : > { %516 = vsyncadd (%p432_p8), %s367_s28, 4294967168  ;;  %p15_p9 = scmp.ge.s32.totalorder %s588_s22, 4   ;;  %s765_s17 = smov %s523_s18 }
 0x1d9   : > { %s766_s18 = smov %s527_s19  ;;  %s767_s19 = smov %s599_s25 }
 0x1da   : > { %s768_s20 = smov %s588_s22  ;;  %17 = sbr.rel (!%p15_p9) target bundleno = 5 (0x5), region = 71 }
 0x1df   :  { %373 = vsyncpa [#allocation4], 1 }
 0x1e0   :  { %375 = vsyncpa [#allocation4 + $0x1], 1 }

// kernel: tpu_custom_call.1
= control target key start
LH: loop header
LB: loop body
LE: loop exit
PB: predicated region body
PF: predicated region fallthrough
CT: control target
= control target key end

     0   :  { %s758_s0 = inlined_call_operand.vmem [shape: f32[2,4,256], index: 0, kind: input, shape index: {}]   ;;  %s759_s1 = inlined_call_operand.vmem [shape: f32[256,64], index: 1, kind: input, shape index: {}]   ;;  %s760_s2 = inlined_call_operand.vmem [shape: f32[4,256], index: 2, kind: input, shape index: {}]   ;;  %s761_s3 = inlined_call_operand.<no memory space> [shape: f32[1], index: 3, kind: input, shape index: {}]   ;;  %s762_s4 = inlined_call_operand.hbm [shape: f32[2,4,256], index: 4, kind: output, shape index: {}]  }
   0x1   :  { %9 = sst [smem:[#allocation2]] %s761_s3 }
   0x2   :  { %10 = vsyncpa [#allocation4], 0 }
   0x3   :  { %12 = vsyncpa [#allocation4 + $0x1], 0  ;;  %s563_s17 = smov 0   ;;  %s565_s18 = smov 0  }
   0x4   :  { %s567_s19 = smov 0   ;;  %s569_s20 = smov 0  }
   0x5 LB: > { %s584_s3 = sadd.s32 4294967295, %s531_s20   ;;  %s414_s21 = sadd.s32 4294967294, %s531_s20   ;;  %s531_s20 = sphi %s569_s20, %s768_s20   ;;  %s527_s19 = sphi %s567_s19, %s767_s19   ;;  %s523_s18 = sphi %s565_s18, %s766_s18   ;;  %s519_s17 = sphi %s563_s17, %s765_s17  }
   0x6   : > { %s588_s22 = sadd.s32 1, %s531_s20   ;;  %s114_s23 = sadd.s32 1, %s527_s19 }
   0x7   : > { %s111_s24 = ssub.s32 %s531_s20, %s588_s22  ;;  %p124_p0 = scmp.ne.s32.totalorder %s527_s19, %s523_s18 }
   0x8   : > { %p112_p1 = scmp.eq.s32.totalorder %s111_s24, 0  ;;  %p125_p2 = scmp.eq.s32.totalorder %s584_s3, 1 }
   0x9   : > { %p130_p3 = scmp.ne.s32.totalorder %s523_s18, %s519_s17  ;;  %p131_p4 = scmp.eq.s32.totalorder %s414_s21, 1 }
   0xa   : > { %s599_s25 = scalar_select %p112_p1, %s527_s19, %s114_s23  }
   0xb   : > { %p601_p5 = por %p125_p2, %p124_p0  ;;  %p605_p6 = por %p131_p4, %p130_p3 }
   0xc   : > { %p417_p7 = scmp.ge.s32.totalorder %s531_s20, 1  ;;  %p166_p8 = scmp.lt.s32.totalorder %s531_s20, 3 }
   0xe   : > { %p167_p9 = pnand %p417_p7, %p166_p8 }
   0xf   : > { %p192_p10 = scmp.lt.s32.totalorder (!%p167_p9), %s584_s3, 1  ;;  %s533_s21 = smov (!%p167_p9), 64  }
  0x10   : > { %170 = sbr.rel (%p167_p9) target bundleno = 465 (0x1d1), region = 36  ;;  %s309_s28 = sld [smem:[#allocation2]] (!%p167_p9) }
  0x11   : > { %s189_s29 = sand.u32 (!%p167_p9), 1, %s523_s18   ;;  %s427_s5 = sshll.u32 (!%p167_p9), %s584_s3, 3 }
  0x12   : > { %s418_s30 = sshll.u32 (!%p167_p9), %s189_s29, 3  ;;  %s339_s12 = scalar_lea.sflag (!%p167_p9), [#allocation4], %s189_s29 }
  0x13   : > { %s191_s9 = scalar_lea.vmem (!%p167_p9), [#allocation3], %s418_s30  ;;  %s489_s16 = scalar_lea.hbm (!%p167_p9), %s762_s4, 16 }
  0x14   : > { %s352_s10 = sshll.u32 (!%p167_p9), %s191_s9, 4  ;;  %s353_s10 = int_to_ptr.vmem [resolvable:$true] %s352_s10 }
  0x15   : > { %v213_v0 = vld [vmem:[%s759_s1 + $0x78] sm:$0xff]  ;;  %v212_v2 = vld [vmem:[%s759_s1 + $0x70] sm:$0xff]  ;;  %v211_v4 = vld [vmem:[%s759_s1 + $0x68] sm:$0xff]  ;;  %s193_s14 = scalar_select %p192_p10, %s584_s3, 1  ;;  %vm280_vm0 = vcmask 523264   ;;  %vm285_vm1 = vcmask 1043456  }
  0x16   : > { %v229_v1 = vld [vmem:[%s759_s1 + $0xf8] sm:$0xff]  ;;  %236 = vmatpush.msra.mxu0 %v213_v0  ;;  %v228_v3 = vld [vmem:[%s759_s1 + $0xf0] sm:$0xff]  ;;  %v227_v5 = vld [vmem:[%s759_s1 + $0xe8] sm:$0xff]  ;;  %v310_v58 = vstv %s309_s28 }
  0x17   : > { %256 = vmatpush.msra.mxu1 %v229_v1  ;;  %v210_v6 = vld [vmem:[%s759_s1 + $0x60] sm:$0xff]  ;;  %s426_s24 = sshll.u32 %s193_s14, 3  ;;  %v209_v8 = vld [vmem:[%s759_s1 + $0x58] sm:$0xff]  ;;  %v208_v10 = vld [vmem:[%s759_s1 + $0x50] sm:$0xff] }
  0x18   : > { %237 = vmatpush.msra.mxu0 %v212_v2  ;;  %v226_v7 = vld [vmem:[%s759_s1 + $0xe0] sm:$0xff]  ;;  %v225_v9 = vld [vmem:[%s759_s1 + $0xd8] sm:$0xff]  ;;  %s196_s8 = scalar_lea.vmem %s758_s0, %s426_s24  ;;  %v224_v11 = vld [vmem:[%s759_s1 + $0xd0] sm:$0xff] }
  0x19   : > { %257 = vmatpush.msra.mxu1 %v228_v3  ;;  %v207_v12 = vld [vmem:[%s759_s1 + $0x48] sm:$0xff]  ;;  %v658_v14 = vld [vmem:[%s196_s8] sm:$0xff]  ;;  %v205_v17 = vld [vmem:[%s759_s1 + $0x38] sm:$0xff]  ;;  %s350_s8 = scalar_lea.hbm %s762_s4, %s427_s5 }
  0x1a   : > { %238 = vmatpush.msra.mxu0 %v211_v4  ;;  %v223_v13 = vld [vmem:[%s759_s1 + $0xc8] sm:$0xff]  ;;  %231 = vst [vmem:[#allocation1] ss:$2 sm:$0xff] %v658_v14  ;;  %v206_v15 = vld [vmem:[%s759_s1 + $0x40] sm:$0xff]  ;;  %v221_v18 = vld [vmem:[%s759_s1 + $0xb8] sm:$0xff]  ;;  %s354_s11 = sshll.u32 %s350_s8, 4  ;;  %s355_s11 = int_to_ptr.hbm [resolvable:$true] %s354_s11 }
  0x1b   : > { %258 = vmatpush.msra.mxu1 %v227_v5  ;;  %v222_v16 = vld [vmem:[%s759_s1 + $0xc0] sm:$0xff]  ;;  %v204_v19 = vld [vmem:[%s759_s1 + $0x30] sm:$0xff]  ;;  %v203_v21 = vld [vmem:[%s759_s1 + $0x28] sm:$0xff]  ;;  %s483_s13 = sshra.s32 %s355_s11, 4  ;;  %s484_s13 = int_to_ptr.hbm [resolvable:$true] %s483_s13 }
  0x1c   : > { %239 = vmatpush.msra.mxu0 %v210_v6  ;;  %v220_v20 = vld [vmem:[%s759_s1 + $0xb0] sm:$0xff]  ;;  %v219_v22 = vld [vmem:[%s759_s1 + $0xa8] sm:$0xff]  ;;  %v202_v23 = vld [vmem:[%s759_s1 + $0x20] sm:$0xff]  ;;  %s485_s3 = scalar_lea.hbm %s484_s13, 8  ;;  %p490_p0 = scmp.lt.s32.totalorder %s484_s13, %s762_s4 }
  0x1d   : > { %259 = vmatpush.msra.mxu1 %v226_v7  ;;  %v218_v24 = vld [vmem:[%s759_s1 + $0xa0] sm:$0xff]  ;;  %v201_v25 = vld [vmem:[%s759_s1 + $0x18] sm:$0xff]  ;;  %v200_v27 = vld [vmem:[%s759_s1 + $0x10] sm:$0xff]  ;;  %v534_v7 = vmov 839922192   ;;  %p486_p11 = scmp.ne.s32.totalorder %s484_s13, %s485_s3  ;;  %p491_p1 = scmp.lt.s32.totalorder %s489_s16, %s485_s3 }
  0x1e   : > { %240 = vmatpush.msra.mxu0 %v209_v8  ;;  %v217_v26 = vld [vmem:[%s759_s1 + $0x98] sm:$0xff]  ;;  %v216_v28 = vld [vmem:[%s759_s1 + $0x90] sm:$0xff]  ;;  %v199_v29 = vld [vmem:[%s759_s1 + $0x8] sm:$0xff]  ;;  %v332_v8 = vunpack.c.l.s4 %v534_v7 }
  0x1f   : > { %260 = vmatpush.msra.mxu1 %v225_v9  ;;  %v215_v30 = vld [vmem:[%s759_s1 + $0x88] sm:$0xff]  ;;  %v198_v31 = vld [vmem:[%s759_s1] sm:$0xff]  ;;  %p487_p12 = pnand %p486_p11, %p601_p5  ;;  %p492_p2 = por %p491_p1, %p490_p0 }
  0x20   : > { %241 = vmatpush.msra.mxu0 %v208_v10  ;;  %v214_v32 = vld [vmem:[%s759_s1 + $0x80] sm:$0xff]  ;;  %v333_v9 = vunpack.c.0.s8 %v332_v8 }
  0x21   : > { %261 = vmatpush.msra.mxu1 %v224_v11  ;;  %v232_v33 = vld.sshfl [vmem:[#allocation1] sm:$0xff pattern:$0x75316420]  ;;  %v233_v34 = vld.sshfl [vmem:[#allocation1 + $0x8] sm:$0xff pattern:$0x75316420]  ;;  %p488_p13 = pneg %p487_p12 }
  0x22   : > { %242 = vmatpush.msra.mxu0 %v207_v12  ;;  %v282_v40 = vld [vmem:[%s760_s2] sm:$0xff] }
  0x23   : > { %262 = vmatpush.msra.mxu1 %v223_v13  ;;  %p493_p3 = pnand %p492_p2, %p488_p13 }
  0x24   : > { %243 = vmatpush.msra.mxu0 %v206_v15 }
  0x25   : > { %263 = vmatpush.msra.mxu1 %v222_v16 }
  0x26   : > { %244 = vmatpush.msra.mxu0 %v205_v17 }
  0x27   : > { %264 = vmatpush.msra.mxu1 %v221_v18 }
  0x28   : > { %245 = vmatpush.msra.mxu0 %v204_v19 }
  0x29   : > { %265 = vmatpush.msra.mxu1 %v220_v20 }
  0x2a   : > { %246 = vmatpush.msra.mxu0 %v203_v21 }
  0x2b   : > { %266 = vmatpush.msra.mxu1 %v219_v22 }
  0x2c   : > { %247 = vmatpush.msra.mxu0 %v202_v23 }
  0x2d   : > { %267 = vmatpush.msra.mxu1 %v218_v24 }
  0x2e   : > { %248 = vmatpush.msra.mxu0 %v201_v25 }
  0x2f   : > { %268 = vmatpush.msra.mxu1 %v217_v26 }
  0x30   : > { %249 = vmatpush.msra.mxu0 %v200_v27 }
  0x31   : > { %269 = vmatpush.msra.mxu1 %v216_v28 }
  0x32   : > { %250 = vmatpush.msra.mxu0 %v199_v29 }
  0x33   : > { %270 = vmatpush.msra.mxu1 %v215_v30 }
  0x34   : > { %251 = vmatpush.msra.mxu0 %v198_v31 }
  0x35   : > { %271 = vmatpush.msra.mxu1 %v214_v32  ;;  %252 = vmatmul.f32.vlgmr.msra.gmra.mxu0 %v232_v33 }
  0x36   : > { %272 = vmatmul.f32.vlgmr.msra.gmra.mxu1 %v233_v34 }
  0xb2   : > { %v253_v35 = vpop.f32.mrf.mxu0 }
  0xb3   : > { %v273_v36 = vpop.f32.mrf.mxu1 }
  0xb4   : > { %v274_v37 = vadd.f32 %v273_v36, %v253_v35 }
  0xb6   : > { %277 = vrot.lane.b32.xlu0 %v274_v37, %s533_s21 }
 0x128   : > { %v278_v38 = vpop.permute.xlu0 %277 }
 0x129   : > { %v281_v39 = vsel %vm280_vm0, %v274_v37, %v278_v38 }
 0x12a   : > { %v284_v41 = vrot.slane %v281_v39, 4 }
 0x12c   : > { %v286_v42 = vsel %vm285_vm1, %v281_v39, %v284_v41 }
 0x12d   : > { %v288_v43 = vmul.f32 %v286_v42, %v282_v40 }
 0x12f   : > { %290 = vst [vmem:[#allocation1] ss:$2 sm:$0xff] %v288_v43 }
 0x136   : > { %v291_v44 = vld.sshfl [vmem:[#allocation1] sm:$0xff pattern:$0x75316420]  ;;  %v292_v45 = vld.sshfl [vmem:[#allocation1 + $0x8] sm:$0xff pattern:$0x75316420] }
 0x137   : > { %v295_v46 = vsel %vm285_vm1, %v291_v44, 0.0  ;;  %v302_v47 = vsel %vm285_vm1, %v292_v45, 0.0 }
 0x138   : > { %v296_v48 = vrot.slane %v295_v46, 4  ;;  %v303_v49 = vrot.slane %v302_v47, 4 }
 0x13a   : > { %v297_v50 = vadd.f32 %v296_v48, %v295_v46  ;;  %v304_v51 = vadd.f32 %v303_v49, %v302_v47 }
 0x13c   : > { %v298_v52 = vrot.slane %v297_v50, 2  ;;  %v305_v53 = vrot.slane %v304_v51, 2 }
 0x13e   : > { %v299_v54 = vadd.f32 %v298_v52, %v297_v50  ;;  %v306_v55 = vadd.f32 %v305_v53, %v304_v51 }
 0x140   : > { %v300_v56 = vrot.slane %v299_v54, 1  ;;  %v307_v57 = vrot.slane %v306_v55, 1 }
 0x142   : > { %v301_v59 = vadd.f32 %v300_v56, %v299_v54  ;;  %v308_v60 = vadd.f32 %v307_v57, %v306_v55 }
 0x144   : > { %v312_v61 = vadd.f32 %v310_v58, %v308_v60  ;;  %v311_v62 = vadd.f32 %v310_v58, %v301_v59 }
 0x146   : > { %v315_v63 = vrot.slane %v312_v61, 4 }
 0x148   : > { %v316_v0 = vsel %vm285_vm1, %v311_v62, %v315_v63 }
 0x149   : > { %v318_v1 = vmul.f32 %v316_v0, %v658_v14 }
 0x14b   : > { %320 = vst [vmem:[#allocation1] ss:$2 sm:$0xff] %v318_v1 }
 0x152   : > { %v321_v2 = vld.sshfl [vmem:[#allocation1] sm:$0xff pattern:$0x75316420]  ;;  %v322_v3 = vld.sshfl [vmem:[#allocation1 + $0x8] sm:$0xff pattern:$0x75316420] }
 0x153   : > { %v325_v4 = vsel %vm285_vm1, %v321_v2, 0.0  ;;  %v326_v5 = vsel %vm285_vm1, %v322_v3, 0.0 }
 0x154   : > { %v327_v6 = vadd.f32 %v326_v5, %v325_v4 }
 0x156   : > { %328 = vadd.xlane.f32.xlu0 %v327_v6 }
 0x1c9   : > { %v329_v10 = vpop.xlane.xlu0 %328 }
 0x1ca   : > { %v334_v11 = vperm.slane %v329_v10, %v333_v9 }
 0x1cc   : > { %v336_v12 = vadd.f32 %v334_v11, %v658_v14 }
 0x1ce   : > { %337 = vst [vmem:[%s191_s9] sm:$0xff] %v336_v12 }
 0x1cf   : > { %496 = shalt.err (!%p493_p3)
}
 0x1d0   : > { %428 = dma.vmem_to_hbm [thread:$0]  (%p601_p5), %s353_s10, 128, %s355_s11, %s339_s12  }
 0x1d1 PF: > { %p434_p4 = scmp.ge.s32.totalorder %s531_s20, 2  ;;  %s366_s24 = sand.u32 1, %s519_s17  }
 0x1d2   : > { %s367_s28 = scalar_lea.sflag [#allocation4], %s366_s24 }
 0x1d3   : > { %p431_p7 = pnand %p434_p4, %p605_p6 }
 0x1d5   : > { %p432_p8 = pneg %p431_p7 }
 0x1d7   : > { %514 = dma.done.wait (%p432_p8), %s367_s28, 128  }
 0x1d8   : > { %516 = vsyncadd (%p432_p8), %s367_s28, 4294967168  ;;  %p15_p9 = scmp.ge.s32.totalorder %s588_s22, 4   ;;  %s765_s17 = smov %s523_s18 }
 0x1d9   : > { %s766_s18 = smov %s527_s19  ;;  %s767_s19 = smov %s599_s25 }
 0x1da   : > { %s768_s20 = smov %s588_s22  ;;  %17 = sbr.rel (!%p15_p9) target bundleno = 5 (0x5), region = 71 }
 0x1df   :  { %373 = vsyncpa [#allocation4], 1 }
 0x1e0   :  { %375 = vsyncpa [#allocation4 + $0x1], 1 }

// kernel: tpu_custom_call.1
= control target key start
LH: loop header
LB: loop body
LE: loop exit
PB: predicated region body
PF: predicated region fallthrough
CT: control target
= control target key end

     0   :  { %s786_s0 = inlined_call_operand.vmem [shape: f32[2,4,256], index: 0, kind: input, shape index: {}]   ;;  %s787_s1 = inlined_call_operand.vmem [shape: f32[256,64], index: 1, kind: input, shape index: {}]   ;;  %s788_s2 = inlined_call_operand.vmem [shape: f32[4,4], index: 2, kind: input, shape index: {}]   ;;  %s789_s3 = inlined_call_operand.<no memory space> [shape: f32[1], index: 3, kind: input, shape index: {}]   ;;  %s790_s4 = inlined_call_operand.hbm [shape: f32[2,4,256], index: 4, kind: output, shape index: {}]  }
   0x1   :  { %9 = sst [smem:[#allocation2]] %s789_s3 }
   0x2   :  { %10 = vsyncpa [#allocation4], 0 }
   0x3   :  { %12 = vsyncpa [#allocation4 + $0x1], 0  ;;  %s589_s17 = smov 0   ;;  %s591_s18 = smov 0  }
   0x4   :  { %s593_s19 = smov 0   ;;  %s595_s20 = smov 0  }
   0x5 LB: > { %s610_s3 = sadd.s32 4294967295, %s557_s20   ;;  %s438_s21 = sadd.s32 4294967294, %s557_s20   ;;  %s557_s20 = sphi %s595_s20, %s796_s20   ;;  %s553_s19 = sphi %s593_s19, %s795_s19   ;;  %s549_s18 = sphi %s591_s18, %s794_s18   ;;  %s545_s17 = sphi %s589_s17, %s793_s17  }
   0x6   : > { %s614_s22 = sadd.s32 1, %s557_s20   ;;  %s114_s23 = sadd.s32 1, %s553_s19 }
   0x7   : > { %s111_s24 = ssub.s32 %s557_s20, %s614_s22  ;;  %p124_p0 = scmp.ne.s32.totalorder %s553_s19, %s549_s18 }
   0x8   : > { %p112_p1 = scmp.eq.s32.totalorder %s111_s24, 0  ;;  %p125_p2 = scmp.eq.s32.totalorder %s610_s3, 1 }
   0x9   : > { %p130_p3 = scmp.ne.s32.totalorder %s549_s18, %s545_s17  ;;  %p131_p4 = scmp.eq.s32.totalorder %s438_s21, 1 }
   0xa   : > { %s625_s25 = scalar_select %p112_p1, %s553_s19, %s114_s23  }
   0xb   : > { %p627_p5 = por %p125_p2, %p124_p0  ;;  %p631_p6 = por %p131_p4, %p130_p3 }
   0xc   : > { %p441_p7 = scmp.ge.s32.totalorder %s557_s20, 1  ;;  %p166_p8 = scmp.lt.s32.totalorder %s557_s20, 3 }
   0xe   : > { %p167_p9 = pnand %p441_p7, %p166_p8 }
   0xf   : > { %p192_p10 = scmp.lt.s32.totalorder (!%p167_p9), %s610_s3, 1  ;;  %s277_s29 = sld [smem:[#allocation2]] (!%p167_p9) }
  0x10   : > { %170 = sbr.rel (%p167_p9) target bundleno = 693 (0x2b5), region = 36  ;;  %s559_s30 = smov (!%p167_p9), 64  }
  0x11   : > { %s453_s6 = sshll.u32 (!%p167_p9), %s610_s3, 3  ;;  %s515_s23 = scalar_lea.hbm (!%p167_p9), %s790_s4, 16 }
  0x12   : > { %s374_s10 = scalar_lea.hbm (!%p167_p9), %s790_s4, %s453_s6 }
  0x13   : > { %s378_s13 = sshll.u32 (!%p167_p9), %s374_s10, 4  ;;  %s379_s13 = int_to_ptr.hbm [resolvable:$true] %s378_s13 }
  0x15   : > { %v213_v0 = vld [vmem:[%s787_s1 + $0x78] sm:$0xff]  ;;  %v212_v2 = vld [vmem:[%s787_s1 + $0x70] sm:$0xff]  ;;  %v211_v4 = vld [vmem:[%s787_s1 + $0x68] sm:$0xff]  ;;  %s193_s14 = scalar_select %p192_p10, %s610_s3, 1  ;;  %vm283_vm0 = vcmask 1043456   ;;  %vm279_vm1 = vcmask 31744   ;;  %v278_v39 = vstv %s277_s29 }
  0x16   : > { %v229_v1 = vld [vmem:[%s787_s1 + $0xf8] sm:$0xff]  ;;  %236 = vmatpush.msra.mxu0 %v213_v0  ;;  %v228_v3 = vld [vmem:[%s787_s1 + $0xf0] sm:$0xff]  ;;  %v227_v5 = vld [vmem:[%s787_s1 + $0xe8] sm:$0xff]  ;;  %vm310_vm2 = vcmask 519168  }
  0x17   : > { %256 = vmatpush.msra.mxu1 %v229_v1  ;;  %v210_v6 = vld [vmem:[%s787_s1 + $0x60] sm:$0xff]  ;;  %s452_s24 = sshll.u32 %s193_s14, 3  ;;  %v209_v8 = vld [vmem:[%s787_s1 + $0x58] sm:$0xff]  ;;  %v208_v10 = vld [vmem:[%s787_s1 + $0x50] sm:$0xff]  ;;  %v560_v1 = vmov 839922192  }
  0x18   : > { %237 = vmatpush.msra.mxu0 %v212_v2  ;;  %v226_v7 = vld [vmem:[%s787_s1 + $0xe0] sm:$0xff]  ;;  %v225_v9 = vld [vmem:[%s787_s1 + $0xd8] sm:$0xff]  ;;  %s672_s8 = scalar_lea.vmem %s786_s0, %s452_s24  ;;  %v224_v11 = vld [vmem:[%s787_s1 + $0xd0] sm:$0xff]  ;;  %v356_v2 = vunpack.c.l.s4 %v560_v1  ;;  %s509_s14 = sshra.s32 %s379_s13, 4  ;;  %s510_s14 = int_to_ptr.hbm [resolvable:$true] %s509_s14 }
  0x19   : > { %257 = vmatpush.msra.mxu1 %v228_v3  ;;  %v207_v12 = vld [vmem:[%s787_s1 + $0x48] sm:$0xff]  ;;  %v687_v14 = vld [vmem:[%s672_s8] sm:$0xff]  ;;  %v205_v17 = vld [vmem:[%s787_s1 + $0x38] sm:$0xff]  ;;  %s511_s15 = scalar_lea.hbm %s510_s14, 8  ;;  %p516_p0 = scmp.lt.s32.totalorder %s510_s14, %s790_s4 }
  0x1a   : > { %238 = vmatpush.msra.mxu0 %v211_v4  ;;  %v223_v13 = vld [vmem:[%s787_s1 + $0xc8] sm:$0xff]  ;;  %231 = vst [vmem:[#allocation1] ss:$2 sm:$0xff] %v687_v14  ;;  %v206_v15 = vld [vmem:[%s787_s1 + $0x40] sm:$0xff]  ;;  %v221_v18 = vld [vmem:[%s787_s1 + $0xb8] sm:$0xff]  ;;  %v357_v4 = vunpack.c.0.s8 %v356_v2  ;;  %p512_p11 = scmp.ne.s32.totalorder %s510_s14, %s511_s15  ;;  %p517_p1 = scmp.lt.s32.totalorder %s515_s23, %s511_s15 }
  0x1b   : > { %258 = vmatpush.msra.mxu1 %v227_v5  ;;  %v222_v16 = vld [vmem:[%s787_s1 + $0xc0] sm:$0xff]  ;;  %v204_v19 = vld [vmem:[%s787_s1 + $0x30] sm:$0xff]  ;;  %v203_v21 = vld [vmem:[%s787_s1 + $0x28] sm:$0xff] }
  0x1c   : > { %239 = vmatpush.msra.mxu0 %v210_v6  ;;  %v220_v20 = vld [vmem:[%s787_s1 + $0xb0] sm:$0xff]  ;;  %v219_v22 = vld [vmem:[%s787_s1 + $0xa8] sm:$0xff]  ;;  %v202_v23 = vld [vmem:[%s787_s1 + $0x20] sm:$0xff]  ;;  %p513_p12 = pnand %p512_p11, %p627_p5  ;;  %p518_p2 = por %p517_p1, %p516_p0 }
  0x1d   : > { %259 = vmatpush.msra.mxu1 %v226_v7  ;;  %v218_v24 = vld [vmem:[%s787_s1 + $0xa0] sm:$0xff]  ;;  %v201_v25 = vld [vmem:[%s787_s1 + $0x18] sm:$0xff]  ;;  %v200_v27 = vld [vmem:[%s787_s1 + $0x10] sm:$0xff] }
  0x1e   : > { %240 = vmatpush.msra.mxu0 %v209_v8  ;;  %v217_v26 = vld [vmem:[%s787_s1 + $0x98] sm:$0xff]  ;;  %v216_v28 = vld [vmem:[%s787_s1 + $0x90] sm:$0xff]  ;;  %v199_v29 = vld [vmem:[%s787_s1 + $0x8] sm:$0xff]  ;;  %p514_p13 = pneg %p513_p12 }
  0x1f   : > { %260 = vmatpush.msra.mxu1 %v225_v9  ;;  %v215_v30 = vld [vmem:[%s787_s1 + $0x88] sm:$0xff]  ;;  %v198_v31 = vld [vmem:[%s787_s1] sm:$0xff] }
  0x20   : > { %241 = vmatpush.msra.mxu0 %v208_v10  ;;  %v214_v32 = vld [vmem:[%s787_s1 + $0x80] sm:$0xff]  ;;  %p519_p3 = pnand %p518_p2, %p514_p13 }
  0x21   : > { %261 = vmatpush.msra.mxu1 %v224_v11  ;;  %v232_v33 = vld.sshfl [vmem:[#allocation1] sm:$0xff pattern:$0x75316420]  ;;  %v233_v34 = vld.sshfl [vmem:[#allocation1 + $0x8] sm:$0xff pattern:$0x75316420] }
  0x22   : > { %242 = vmatpush.msra.mxu0 %v207_v12  ;;  %v276_v38 = vld [vmem:[%s788_s2] sm:$0xf]  ;;  %v331_v49 = vld [vmem:[%s672_s8 + $0x4] sm:$0xf] }
  0x23   : > { %262 = vmatpush.msra.mxu1 %v223_v13  ;;  %v307_v42 = vld [vmem:[%s672_s8] sm:$0xf]  ;;  %s189_s8 = sand.u32 1, %s549_s18  }
  0x24   : > { %243 = vmatpush.msra.mxu0 %v206_v15  ;;  %s442_s5 = sshll.u32 %s189_s8, 3  ;;  %s363_s3 = scalar_lea.sflag [#allocation4], %s189_s8 }
  0x25   : > { %263 = vmatpush.msra.mxu1 %v222_v16  ;;  %s191_s11 = scalar_lea.vmem [#allocation3], %s442_s5 }
  0x26   : > { %244 = vmatpush.msra.mxu0 %v205_v17  ;;  %s376_s12 = sshll.u32 %s191_s11, 4  ;;  %s377_s12 = int_to_ptr.vmem [resolvable:$true] %s376_s12 }
  0x27   : > { %264 = vmatpush.msra.mxu1 %v221_v18 }
  0x28   : > { %245 = vmatpush.msra.mxu0 %v204_v19 }
  0x29   : > { %265 = vmatpush.msra.mxu1 %v220_v20 }
  0x2a   : > { %246 = vmatpush.msra.mxu0 %v203_v21 }
  0x2b   : > { %266 = vmatpush.msra.mxu1 %v219_v22 }
  0x2c   : > { %247 = vmatpush.msra.mxu0 %v202_v23 }
  0x2d   : > { %267 = vmatpush.msra.mxu1 %v218_v24 }
  0x2e   : > { %248 = vmatpush.msra.mxu0 %v201_v25 }
  0x2f   : > { %268 = vmatpush.msra.mxu1 %v217_v26 }
  0x30   : > { %249 = vmatpush.msra.mxu0 %v200_v27 }
  0x31   : > { %269 = vmatpush.msra.mxu1 %v216_v28 }
  0x32   : > { %250 = vmatpush.msra.mxu0 %v199_v29 }
  0x33   : > { %270 = vmatpush.msra.mxu1 %v215_v30 }
  0x34   : > { %251 = vmatpush.msra.mxu0 %v198_v31 }
  0x35   : > { %271 = vmatpush.msra.mxu1 %v214_v32  ;;  %252 = vmatmul.f32.vlgmr.msra.gmra.mxu0 %v232_v33 }
  0x36   : > { %272 = vmatmul.f32.vlgmr.msra.gmra.mxu1 %v233_v34 }
  0xb2   : > { %v253_v35 = vpop.f32.mrf.mxu0 }
  0xb3   : > { %v273_v36 = vpop.f32.mrf.mxu1 }
  0xb4   : > { %v274_v37 = vadd.f32 %v273_v36, %v253_v35 }
  0xb6   : > { %445 = vmatpush.msk.msra.mxu2 %vm283_vm0, %v274_v37 }
  0xb7   : > { %446 = vmatmul.msk.f32.vlgmr.msra.gmra.mxu2 %vm279_vm1, %v276_v38 }
 0x13a   : > { %v304_v40 = vpop.f32.mrf.mxu2 }
 0x13b   : > { %v305_v41 = vadd.f32 %v304_v40, %v278_v39 }
 0x13d   : > { %v315_v43 = vperm.slane %v305_v41, 1  ;;  %v308_v44 = vperm.slane %v305_v41, 0  ;;  %v338_v47 = vperm.slane %v305_v41, 3  ;;  %v332_v48 = vperm.slane %v305_v41, 2 }
 0x13f   : > { %317 = vrot.lane.b32.xlu0 %v315_v43, %s559_s30  ;;  %v309_v45 = vmul.f32 %v308_v44, %v307_v42  ;;  %v333_v50 = vmul.f32 %v332_v48, %v331_v49 }
 0x141   : > { %v311_v46 = vsel %vm310_vm2, %v309_v45, 0.0  ;;  %v334_v51 = vsel %vm310_vm2, %v333_v50, 0.0 }
 0x142   : > { %312 = vadd.xlane.f32.xlu2 %v311_v46 }
 0x147   : > { %340 = vrot.lane.b32.xlu0 %v338_v47, %s559_s30 }
 0x171   : > { %335 = vadd.xlane.f32.xlu0 %v334_v51 }
 0x1b1   : > { %v318_v52 = vpop.permute.xlu0 %317 }
 0x1b2   : > { %v320_v53 = vmul.f32 %v318_v52, %v307_v42 }
 0x1b4   : > { %322 = vst [vmem:[#allocation1] ss:$2 sm:$0xff] %v320_v53 }
 0x1b5   : > { %v313_v62 = vpop.xlane.xlu2 %312 }
 0x1b9   : > { %v341_v54 = vpop.permute.xlu0 %340 }
 0x1ba   : > { %v343_v55 = vmul.f32 %v341_v54, %v331_v49 }
 0x1bb   : > { %v323_v56 = vld.sshfl [vmem:[#allocation1] sm:$0xff pattern:$0x75316420] }
 0x1bc   : > { %324 = vrot.lane.b32.xlu1 %v323_v56, %s559_s30  ;;  %345 = vst [vmem:[#allocation1] ss:$2 sm:$0xff] %v343_v55 }
 0x1c3   : > { %v346_v57 = vld.sshfl [vmem:[#allocation1] sm:$0xff pattern:$0x75316420] }
 0x1c4   : > { %347 = vrot.lane.b32.xlu1 %v346_v57, %s559_s30 }
 0x1e4   : > { %v336_v3 = vpop.xlane.xlu0 %335 }
 0x22e   : > { %v325_v58 = vpop.permute.xlu1 %324 }
 0x22f   : > { %v327_v59 = vsel %vm310_vm2, %v325_v58, 0.0 }
 0x230   : > { %328 = vadd.xlane.f32.xlu2 %v327_v59 }
 0x236   : > { %v348_v60 = vpop.permute.xlu1 %347 }
 0x237   : > { %v350_v61 = vsel %vm310_vm2, %v348_v60, 0.0 }
 0x238   : > { %351 = vadd.xlane.f32.xlu1 %v350_v61 }
 0x2a3   : > { %v329_v63 = vpop.xlane.xlu2 %328 }
 0x2a4   : > { %v330_v0 = vadd.f32 %v329_v63, %v313_v62 }
 0x2a6   : > { %v337_v5 = vadd.f32 %v336_v3, %v330_v0 }
 0x2ab   : > { %v352_v6 = vpop.xlane.xlu1 %351 }
 0x2ac   : > { %v353_v7 = vadd.f32 %v352_v6, %v337_v5 }
 0x2ae   : > { %v358_v8 = vperm.slane %v353_v7, %v357_v4 }
 0x2b0   : > { %v360_v9 = vadd.f32 %v358_v8, %v687_v14 }
 0x2b2   : > { %361 = vst [vmem:[%s191_s11] sm:$0xff] %v360_v9 }
 0x2b3   : > { %522 = shalt.err (!%p519_p3)
}
 0x2b4   : > { %454 = dma.vmem_to_hbm [thread:$0]  (%p627_p5), %s377_s12, 128, %s379_s13, %s363_s3  }
 0x2b5 PF: > { %p460_p4 = scmp.ge.s32.totalorder %s557_s20, 2  ;;  %s390_s29 = sand.u32 1, %s545_s17  }
 0x2b6   : > { %s391_s30 = scalar_lea.sflag [#allocation4], %s390_s29 }
 0x2b7   : > { %p457_p7 = pnand %p460_p4, %p631_p6 }
 0x2b9   : > { %p458_p8 = pneg %p457_p7 }
 0x2bb   : > { %540 = dma.done.wait (%p458_p8), %s391_s30, 128  }
 0x2bc   : > { %542 = vsyncadd (%p458_p8), %s391_s30, 4294967168  ;;  %p15_p9 = scmp.ge.s32.totalorder %s614_s22, 4   ;;  %s793_s17 = smov %s549_s18 }
 0x2bd   : > { %s794_s18 = smov %s553_s19  ;;  %s795_s19 = smov %s625_s25 }
 0x2be   : > { %s796_s20 = smov %s614_s22  ;;  %17 = sbr.rel (!%p15_p9) target bundleno = 5 (0x5), region = 71 }
 0x2c3   :  { %397 = vsyncpa [#allocation4], 1 }
 0x2c4   :  { %399 = vsyncpa [#allocation4 + $0x1], 1 }

</bundles_post_ra>
